<compile_context>
chip_gen: v6e
topology: v6e:2x2x1
jax: 0.10.0
libtpu: 0.0.40
codegen_flags: <defaults>
</compile_context>

<pallas_src>
import functools

import jax
import jax.numpy as jnp
import numpy as np
from jax.experimental import pallas as pl
from jax.experimental.pallas import tpu as pltpu


def _crossmodal_cl_kernel(anchor_ref, feat_ref, label_ref, out_ref, *,
                          inv_temperature, batch_size, tile_b):
    i = pl.program_id(0)

    a = anchor_ref[...]                       # (TB, D)    native dtype
    f = feat_ref[...]                         # (TB, N, D) native dtype
    lbl = label_ref[...]                      # (TB, 1)    int32

    # logits[b, n] = <a[b], f[b, n]> / T — multiply in native dtype, reduce in f32.
    prod = (a[:, None, :] * f).astype(jnp.float32)              # (TB, N, D)
    logits = jnp.sum(prod, axis=-1) * inv_temperature           # (TB, N) f32

    # Row max (the explicit detached max-subtraction in the module; identical
    # to the numerically stable softmax shift, so it cancels in the CE).
    m = jnp.max(logits, axis=-1, keepdims=True)                 # (TB, 1)

    # Fused label pick on the *un-shifted* logits via one-hot compare.
    col = jax.lax.broadcasted_iota(jnp.int32, logits.shape, 1)  # (TB, N)
    picked = jnp.sum(jnp.where(col == lbl, logits, 0.0),
                     axis=-1, keepdims=True)                    # (TB, 1)

    # log-sum-exp over classes.
    lse = jnp.log(jnp.sum(jnp.exp(logits - m), axis=-1, keepdims=True))  # (TB, 1)

    # per-sample NLL: lse(logits) - logits[label] == (m - picked) + lse_shifted
    per_sample = (m - picked) + lse                              # (TB, 1)

    # Mask rows of a partial final tile (padded rows contribute 0).
    row = jax.lax.broadcasted_iota(jnp.int32, per_sample.shape, 0) + i * tile_b
    per_sample = jnp.where(row < batch_size, per_sample, 0.0)

    # Per-tile partial sum; batch mean finished in the wrapper.
    tile_sum = jnp.sum(per_sample, axis=0, keepdims=True)        # (1, 1)
    out_ref[...] = tile_sum.reshape(1, 1, 1)


def _choose_tile_b(B, N, D, itemsize):
    """Pick a batch tile so one features tile is ~2 MiB (double-buffered by
    the pipeline => ~4 MiB), safely under scoped-VMEM on v5e/v6e/v7x."""
    target_bytes = 2 * 1024 * 1024
    per_row = max(1, N * D * itemsize)
    tb = max(1, target_bytes // per_row)
    if tb >= B:
        return int(B)
    tb = max(8, (tb // 8) * 8)      # keep (8, _) sublane divisibility for (TB, D) blocks
    if tb >= B:
        return int(B)
    return int(tb)


def crossmodal_cl(anchor_feature, features, label, temperature=0.07,
                  base_temperature=0.07):
    """Pallas TPU implementation of CrossModal_CL.forward.

    anchor_feature: (B, D)     float32 / bfloat16 (kept in native dtype)
    features:       (B, N, D)  float32 / bfloat16 (kept in native dtype)
    label:          (B,)       int (class index in [0, N))
    returns scalar float32 loss
    """
    del base_temperature  # present in __init__ but unused in forward
    B, D = anchor_feature.shape
    _, N, _ = features.shape
    label2 = jnp.reshape(label, (B, 1)).astype(jnp.int32)

    itemsize = jnp.dtype(features.dtype).itemsize
    tb = _choose_tile_b(B, N, D, itemsize)
    num_tiles = (B + tb - 1) // tb

    kernel = functools.partial(
        _crossmodal_cl_kernel,
        inv_temperature=float(1.0 / float(temperature)),
        batch_size=B,
        tile_b=tb,
    )

    cost = pl.CostEstimate(
        flops=2 * B * N * D + 6 * B * N,
        transcendentals=B * N + B,                      # exp + log
        bytes_accessed=(B * N * D + B * D) * itemsize + B * 4 + num_tiles * 4,
    )

    partials = pl.pallas_call(
        kernel,
        out_shape=jax.ShapeDtypeStruct((num_tiles, 1, 1), jnp.float32),
        grid=(num_tiles,),
        in_specs=[
            pl.BlockSpec((tb, D), lambda i: (i, 0)),        # anchor tile
            pl.BlockSpec((tb, N, D), lambda i: (i, 0, 0)),  # features tile
            pl.BlockSpec((tb, 1), lambda i: (i, 0)),        # labels tile
        ],
        out_specs=pl.BlockSpec((1, 1, 1), lambda i: (i, 0, 0)),
        compiler_params=pltpu.CompilerParams(
            dimension_semantics=("parallel",)),             # megacore-shardable
        cost_estimate=cost,
    )(anchor_feature, features, label2)

    return jnp.sum(partials) / jnp.float32(B)


def _reference(anchor_feature, features, label, temperature=0.07):
    # pure-JAX reference matching the PyTorch module
    logits = jnp.einsum("bd,bnd->bn", anchor_feature.astype(jnp.float32),
                        features.astype(jnp.float32)) / temperature
    logits = logits - jnp.max(logits, axis=-1, keepdims=True)
    logp = logits - jax.nn.logsumexp(logits, axis=-1, keepdims=True)
    nll = -jnp.take_along_axis(logp, label[:, None].astype(jnp.int32), axis=-1)
    return jnp.mean(nll)


if __name__ == "__main__":
    key = jax.random.PRNGKey(0)
    k1, k2, k3 = jax.random.split(key, 3)

    B, N, D = 2, 8, 32
    anchor = jax.random.normal(k1, (B, D), dtype=jnp.float32)
    feats = jax.random.normal(k2, (B, N, D), dtype=jnp.float32)
    label = jax.random.randint(k3, (B,), 0, N, dtype=jnp.int32)

    loss = jax.block_until_ready(crossmodal_cl(anchor, feats, label, temperature=0.07))
    ref = jax.block_until_ready(_reference(anchor, feats, label, temperature=0.07))

    assert np.allclose(np.asarray(loss), np.asarray(ref), rtol=1e-4, atol=1e-5), (
        loss, ref)

    print("KERNEL_OK")
</pallas_src>

<mosaic_0001>
module attributes {stable_mosaic.version = 11 : i64} {
  func.func @_crossmodal_cl_kernel(%arg0: i32, %arg1: memref<2x32xf32, #tpu.memory_space<vmem>>, %arg2: memref<2x8x32xf32, #tpu.memory_space<vmem>>, %arg3: memref<2x1xi32, #tpu.memory_space<vmem>>, %arg4: memref<1x1x1xf32, #tpu.memory_space<vmem>>) attributes {dimension_semantics = [#tpu.dimension_semantics<parallel>], iteration_bounds = array<i64: 1>, scalar_prefetch = 0 : i64, scratch_operands = 0 : i64, tpu.core_type = #tpu.core_type<tc>, window_params = [{transform_indices = @transform_0, window_bounds = array<i64: 2, 32>}, {transform_indices = @transform_1, window_bounds = array<i64: 2, 8, 32>}, {transform_indices = @transform_2, window_bounds = array<i64: 2, 1>}, {transform_indices = @transform_3, window_bounds = array<i64: 1, 1, 1>}]} {
    %c0 = arith.constant 0 : index
    %c0_0 = arith.constant 0 : index
    %0 = vector.load %arg1[%c0, %c0_0] : memref<2x32xf32, #tpu.memory_space<vmem>>, vector<2x32xf32>
    %c0_1 = arith.constant 0 : index
    %c0_2 = arith.constant 0 : index
    %c0_3 = arith.constant 0 : index
    %1 = vector.load %arg2[%c0_1, %c0_2, %c0_3] : memref<2x8x32xf32, #tpu.memory_space<vmem>>, vector<2x8x32xf32>
    %c0_4 = arith.constant 0 : index
    %c0_5 = arith.constant 0 : index
    %2 = vector.load %arg3[%c0_4, %c0_5] : memref<2x1xi32, #tpu.memory_space<vmem>>, vector<2x1xi32>
    %3 = vector.shape_cast %0 : vector<2x32xf32> to vector<2x1x32xf32>
    %4 = vector.broadcast %3 : vector<2x1x32xf32> to vector<2x8x32xf32>
    %5 = arith.mulf %4, %1 : vector<2x8x32xf32>
    %cst = arith.constant dense<0.000000e+00> : vector<2x8xf32>
    %6 = vector.multi_reduction <add>, %5, %cst [2] : vector<2x8x32xf32> to vector<2x8xf32>
    %cst_6 = arith.constant 14.2857141 : f32
    %7 = vector.broadcast %cst_6 : f32 to vector<2x8xf32>
    %8 = arith.mulf %6, %7 : vector<2x8xf32>
    %cst_7 = arith.constant dense<0xFF800000> : vector<2xf32>
    %9 = vector.multi_reduction <maximumf>, %8, %cst_7 [1] : vector<2x8xf32> to vector<2xf32>
    %10 = vector.shape_cast %9 : vector<2xf32> to vector<2x1xf32>
    %11 = tpu.iota {dimensions = array<i32: 1>} : vector<2x8xi32>
    %12 = vector.broadcast %2 : vector<2x1xi32> to vector<2x8xi32>
    %13 = arith.cmpi eq, %11, %12 : vector<2x8xi32>
    %cst_8 = arith.constant 0.000000e+00 : f32
    %14 = vector.broadcast %cst_8 : f32 to vector<2x8xf32>
    %15 = arith.select %13, %8, %14 : vector<2x8xi1>, vector<2x8xf32>
    %cst_9 = arith.constant dense<0.000000e+00> : vector<2xf32>
    %16 = vector.multi_reduction <add>, %15, %cst_9 [1] : vector<2x8xf32> to vector<2xf32>
    %17 = vector.shape_cast %16 : vector<2xf32> to vector<2x1xf32>
    %18 = vector.broadcast %10 : vector<2x1xf32> to vector<2x8xf32>
    %19 = arith.subf %8, %18 : vector<2x8xf32>
    %20 = math.exp %19 : vector<2x8xf32>
    %cst_10 = arith.constant dense<0.000000e+00> : vector<2xf32>
    %21 = vector.multi_reduction <add>, %20, %cst_10 [1] : vector<2x8xf32> to vector<2xf32>
    %22 = vector.shape_cast %21 : vector<2xf32> to vector<2x1xf32>
    %23 = math.log %22 : vector<2x1xf32>
    %24 = arith.subf %10, %17 : vector<2x1xf32>
    %25 = arith.addf %24, %23 : vector<2x1xf32>
    %26 = tpu.iota {dimensions = array<i32: 0>} : vector<2x1xi32>
    %c2_i32 = arith.constant 2 : i32
    %27 = arith.muli %arg0, %c2_i32 : i32
    %28 = vector.broadcast %27 : i32 to vector<2x1xi32>
    %29 = arith.addi %26, %28 : vector<2x1xi32>
    %c2_i32_11 = arith.constant 2 : i32
    %30 = vector.broadcast %c2_i32_11 : i32 to vector<2x1xi32>
    %31 = arith.cmpi slt, %29, %30 : vector<2x1xi32>
    %cst_12 = arith.constant 0.000000e+00 : f32
    %32 = vector.broadcast %cst_12 : f32 to vector<2x1xf32>
    %33 = arith.select %31, %25, %32 : vector<2x1xi1>, vector<2x1xf32>
    %cst_13 = arith.constant dense<0.000000e+00> : vector<1xf32>
    %34 = vector.multi_reduction <add>, %33, %cst_13 [0] : vector<2x1xf32> to vector<1xf32>
    %35 = vector.shape_cast %34 : vector<1xf32> to vector<1x1xf32>
    %36 = vector.shape_cast %35 : vector<1x1xf32> to vector<1x1x1xf32>
    %c0_14 = arith.constant 0 : index
    %c0_15 = arith.constant 0 : index
    %c0_16 = arith.constant 0 : index
    %37 = vector.load %arg4[%c0_14, %c0_15, %c0_16] : memref<1x1x1xf32, #tpu.memory_space<vmem>>, vector<1x1x1xf32>
    tpu.vector_store %arg4[%c0_14, %c0_15, %c0_16], %36 {strides = array<i32>} : memref<1x1x1xf32, #tpu.memory_space<vmem>>, vector<1x1x1xf32>,
    return
  }
  func.func @transform_0(%arg0: i32) -> (i32, i32) {
    %c0_i32 = arith.constant 0 : i32
    %c0_i32_0 = arith.constant 0 : i32
    return %arg0, %c0_i32 : i32, i32
  }
  func.func @transform_1(%arg0: i32) -> (i32, i32, i32) {
    %c0_i32 = arith.constant 0 : i32
    %c0_i32_0 = arith.constant 0 : i32
    %c0_i32_1 = arith.constant 0 : i32
    return %arg0, %c0_i32, %c0_i32_0 : i32, i32, i32
  }
  func.func @transform_2(%arg0: i32) -> (i32, i32) {
    %c0_i32 = arith.constant 0 : i32
    %c0_i32_0 = arith.constant 0 : i32
    return %arg0, %c0_i32 : i32, i32
  }
  func.func @transform_3(%arg0: i32) -> (i32, i32, i32) {
    %c0_i32 = arith.constant 0 : i32
    %c0_i32_0 = arith.constant 0 : i32
    %c0_i32_1 = arith.constant 0 : i32
    return %arg0, %c0_i32, %c0_i32_0 : i32, i32, i32
  }
}

</mosaic_0001>

<bundles_post_ra>
// kernel: tpu_custom_call.1
= control target key start
LH: loop header
LB: loop body
LE: loop exit
PB: predicated region body
PF: predicated region fallthrough
CT: control target
= control target key end

     0   :  { %8 = vsyncpa [#allocation3], 0  ;;  %s287_s0 = inlined_call_operand.vmem [shape: f32[2,32], index: 0, kind: input, shape index: {}]   ;;  %s288_s1 = inlined_call_operand.hbm [shape: f32[2,8,32], index: 1, kind: input, shape index: {}]   ;;  %s289_s2 = inlined_call_operand.vmem [shape: s32[2,1], index: 2, kind: input, shape index: {}]   ;;  %s290_s3 = inlined_call_operand.hbm [shape: f32[1,1,1], index: 3, kind: output, shape index: {}]  }
   0x1   :  { %9 = vsyncpa [#allocation4], 0  ;;  %s237_s12 = smov [#allocation2]  }
   0x2   :  { %s17_s13 = sshll.u32 %s237_s12, 4  ;;  %s18_s13 = int_to_ptr.vmem [resolvable:$true] %s17_s13 }
   0x3   :  { %s201_s14 = scalar_lea.vmem %s18_s13, 256  ;;  %p206_p1 = scmp.lt.s32.totalorder %s18_s13, %s18_s13 }
   0x4   :  { %p202_p0 = scmp.ne.s32.totalorder %s18_s13, %s201_s14  ;;  %p207_p2 = scmp.lt.s32.totalorder %s201_s14, %s201_s14 }
   0x6   :  { %p208_p3 = por %p207_p2, %p206_p1 }
   0x8   :  { %p209_p4 = pnand %p208_p3, %p202_p0 }
   0xa   :  { %212 = shalt.err (!%p209_p4)
}
   0xb   :  { %s238_s15 = smov 128   ;;  %s239_s16 = smov 8  }
   0xc   :  { %23 = dma.hbm_to_vmem [thread:$0]  %s288_s1, 256, %s18_s13, [#allocation3], %s238_s15, %s238_s15, %s239_s16  }
   0xd   :  { %233 = dma.done.wait [#allocation3], 256  }
   0xe   :  { %234 = vsyncadd [#allocation3], 4294967040  ;;  %v45_v0 = vlaneseq  ;;  %v240_v1 = vmov 1966171168   ;;  %v30_v10 = vld [vmem:[#allocation2] sm:$0xff]  ;;  %vm68_vm0 = vcmask 261120  }
   0xf   :  { %v43_v2 = vunpack.c.l.s4 %v240_v1  ;;  %v178_v7 = vld.sshfl [vmem:[%s287_s0] sm:$0x11 pattern:$0x75316420]  ;;  %v31_v13 = vld [vmem:[#allocation2 + $0x8] sm:$0xff]  ;;  %vm89_vm1 = vcmask 1041409  }
  0x10   :  { %v266_v3 = vshrl.u32 %v45_v0, 7  ;;  %v41_v9 = vcombine.high %v178_v7, %v178_v7  ;;  %v80_v19 = vand.u32 127, %v45_v0  ;;  %vm92_vm2 = vcmask 58368   ;;  %v32_v40 = vld [vmem:[%s289_s2] sm:$0x3]  ;;  %s242_s2 = smov [#allocation5]  }
  0x11   :  { %v44_v4 = vunpack.c.0.s8 %v43_v2  ;;  %v241_v29 = vmov 0   ;;  %vm153_vm5 = vcmask 1041408   ;;  %s169_s21 = sshll.u32 %s242_s2, 4  ;;  %vm161_vm6 = vcmask 0   ;;  %s170_s21 = int_to_ptr.vmem [resolvable:$true] %s169_s21 }
  0x12   :  { %v58_v6 = vsub.s32 0, %v266_v3  ;;  %v83_v21 = vsub.s32 %v80_v19, %v266_v3  ;;  %186 = vset.pattern.permute.xlu0 %v241_v29  ;;  %185 = vset.pattern.permute.xlu1 %v241_v29  ;;  %v111_v30 = vsub.s32 1, %v266_v3  ;;  %vm151_vm4 = vcmp.lt.s32.totalorder %v266_v3, 2  ;;  %s213_s22 = scalar_lea.vmem %s170_s21, 16  ;;  %s217_s23 = scalar_lea.vmem %s170_s21, 32 }
  0x13   :  { %v47_v5 = vsub.s32 %v44_v4, %v266_v3  ;;  %p214_p5 = scmp.ne.s32.totalorder %s170_s21, %s213_s22  ;;  %p218_p6 = scmp.lt.s32.totalorder %s170_s21, %s170_s21 }
  0x14   :  { %p219_p7 = scmp.lt.s32.totalorder %s217_s23, %s213_s22 }
  0x15   :  { %v48_v8 = vrot.slane %v178_v7, %v47_v5  ;;  %v55_v12 = vrot.slane %v41_v9, %v47_v5 }
  0x16   :  { %p220_p8 = por %p219_p7, %p218_p6 }
  0x17   :  { %v59_v11 = vrot.slane %v48_v8, %v58_v6  ;;  %v63_v15 = vrot.slane %v55_v12, %v58_v6 }
  0x18   :  { %p221_p9 = pnand %p220_p8, %p214_p5 }
  0x19   :  { %v66_v14 = vmul.f32 %v59_v11, %v30_v10  ;;  %v67_v17 = vmul.f32 %v63_v15, %v31_v13 }
  0x1b   :  { %v69_v16 = vsel %vm68_vm0, %v66_v14, 0.0  ;;  %v72_v18 = vsel %vm68_vm0, %v67_v17, 0.0 }
  0x1c   :  { %70 = vadd.xlane.f32.xlu0 %v69_v16 }
  0x20   :  { %73 = vadd.xlane.f32.xlu0 %v72_v18 }
  0xa5   :  { %v71_v20 = vpop.xlane.xlu0 %70 }
  0xa6   :  { %v75_v22 = vmul.f32 14.285714, %v71_v20 }
  0xa8   :  { %v84_v25 = vrot.slane %v75_v22, %v83_v21 }
  0xa9   :  { %v74_v23 = vpop.xlane.xlu0 %73 }
  0xaa   :  { %v76_v24 = vmul.f32 14.285714, %v74_v23 }
  0xac   :  { %v88_v26 = vrot.slane %v76_v24, %v83_v21 }
  0xae   :  { %v90_v27 = vsel %vm89_vm1, %v88_v26, %v84_v25 }
  0xaf   :  { %v93_v28 = vsel %vm92_vm2, %v90_v27, -inf }
  0xb0   :  { %94 = vmax.xlane.f32.xlu1 %v93_v28 }
 0x139   :  { %v95_v31 = vpop.xlane.xlu1 %94 }
 0x13a   :  { %v108_v32 = vrot.slane %v95_v31, %v58_v6  ;;  %v112_v33 = vrot.slane %v95_v31, %v111_v30 }
 0x13c   :  { %v115_v34 = vsub.f32 %v75_v22, %v108_v32  ;;  %v116_v35 = vsub.f32 %v76_v24, %v112_v33 }
 0x13e   :  { %v117_v36 = vmul.f32 1.442695, %v115_v34  ;;  %v119_v37 = vmul.f32 1.442695, %v116_v35 }
 0x140   :  { %187 = vpow2.f32 %v117_v36 }
 0x141   :  { %189 = vpow2.f32 %v119_v37 }
 0x14d   :  { %v188_v38 = vpop.eup %187 }
 0x14e   :  { %v190_v39 = vpop.eup %189  ;;  %124 = vperm.xlu1 %185, %v188_v38  }
 0x14f   :  { %127 = vperm.xlu0 %186, %v190_v39  }
 0x152   :  { %97 = vperm.xlu1 %185, %v32_v40  }
 0x1c9   :  { %v125_v41 = vpop.permute.xlu1 %124 }
 0x1ca   :  { %v128_v42 = vpop.permute.xlu0 %127  ;;  %v132_v43 = vrot.slane %v125_v41, %v83_v21 }
 0x1cb   :  { %v136_v44 = vrot.slane %v128_v42, %v83_v21 }
 0x1cd   :  { %v98_v45 = vpop.permute.xlu1 %97  ;;  %v137_v46 = vsel %vm89_vm1, %v136_v44, %v132_v43 }
 0x1ce   :  { %vm99_vm3 = vcmp.eq.s32.totalorder %v80_v19, %v98_v45  ;;  %v139_v47 = vsel %vm92_vm2, %v137_v46, 0.0 }
 0x1cf   :  { %140 = vadd.xlane.f32.xlu1 %v139_v47  ;;  %v100_v48 = vsel %vm99_vm3, %v90_v27, 0.0 }
 0x1d0   :  { %v101_v49 = vsel %vm92_vm2, %v100_v48, 0.0 }
 0x1d1   :  { %102 = vadd.xlane.f32.xlu0 %v101_v49 }
 0x258   :  { %v141_v50 = vpop.xlane.xlu1 %140 }
 0x259   :  { %191 = vlog2.f32 %v141_v50 }
 0x25a   :  { %v103_v51 = vpop.xlane.xlu0 %102 }
 0x25b   :  { %v144_v54 = vsub.f32 %v95_v31, %v103_v51 }
 0x266   :  { %v192_v52 = vpop.eup %191 }
 0x267   :  { %v143_v53 = vmul.f32 0.6931472, %v192_v52 }
 0x269   :  { %v145_v55 = vadd.f32 %v144_v54, %v143_v53 }
 0x26b   :  { %v152_v56 = vsel %vm151_vm4, %v145_v55, 0.0 }
 0x26c   :  { %v154_v57 = vsel %vm153_vm5, %v152_v56, 0.0 }
 0x26d   :  { %v155_v58 = vrot.slane %v154_v57, 4 }
 0x26f   :  { %v156_v59 = vadd.f32 %v155_v58, %v154_v57 }
 0x271   :  { %v157_v60 = vrot.slane %v156_v59, 2 }
 0x273   :  { %v158_v61 = vadd.f32 %v157_v60, %v156_v59 }
 0x275   :  { %v159_v62 = vrot.slane %v158_v61, 1 }
 0x277   :  { %v160_v63 = vadd.f32 %v159_v62, %v158_v61 }
 0x279   :  { %162 = vst.msk [vmem:[#allocation5] sm:$0x1] %vm161_vm6, %v160_v63 }
 0x27a   :  { %224 = shalt.err (!%p221_p9)
}
 0x27b   :  { %172 = dma.vmem_to_hbm [thread:$0]  %s170_s21, 16, %s290_s3, [#allocation4]  }
 0x27c   :  { %235 = dma.done.wait [#allocation4], 16  }
 0x27d   :  { %236 = vsyncadd [#allocation4], 4294967280 }
 0x27e   :  { %176 = vsyncpa [#allocation3], 1 }
 0x27f   :  { %177 = vsyncpa [#allocation4], 1 }

</bundles_post_ra>
